<compile_context>
chip_gen: v7x
topology: tpu7x:2x2x1
jax: 0.10.0
libtpu: 0.0.40
codegen_flags: <defaults>
</compile_context>

<pallas_src>
import math
from functools import partial

import jax
import jax.numpy as jnp
from jax import lax
from jax.experimental import pallas as pl
from jax.experimental.pallas import tpu as pltpu


def _cast(x, dtype):
    return x if x.dtype == dtype else x.astype(dtype)


def _pick_tile(dim, requested, quantum):
    """Largest multiple of `quantum` that divides `dim` and is <= requested.

    Falls back to the full dimension when `dim` is not a multiple of `quantum`
    (full-extent blocks are exempt from the (8,128) divisibility rule).
    """
    if dim % quantum != 0:
        return dim
    t = max(quantum, (min(requested, dim) // quantum) * quantum)
    while t >= quantum:
        if dim % t == 0:
            return t
        t -= quantum
    return dim


def _vmem_estimate_bytes(tile_l, tile_s, E, D, q_it, k_it, v_it, m_it, o_it, has_mask):
    blk = tile_l * E * q_it + tile_s * E * k_it + tile_s * D * v_it + tile_l * D * o_it
    if has_mask:
        blk += tile_l * tile_s * m_it
    scratch = tile_l * (D + 2) * 4
    temps = 4 * tile_l * tile_s * 4          # scores / p / masked-p f32 temporaries + headroom
    return 2 * blk + scratch + temps          # x2: double-buffered pipeline blocks


def _mask_attention_kernel(q_ref, k_ref, v_ref, *rest, scale, has_mask, kv_axis,
                           compute_dtype, approx_recip):
    # q_ref: (1, tile_l, E); k_ref: (1, tile_s, E); v_ref: (1, tile_s, D)
    # mask_ref (optional): (1, tile_l, tile_s); o_ref: (1, tile_l, D)
    # scratch: m_sc/l_sc (tile_l, 1) f32, acc_sc (tile_l, D) f32
    if has_mask:
        mask_ref, o_ref, m_sc, l_sc, acc_sc = rest
    else:
        o_ref, m_sc, l_sc, acc_sc = rest

    kv = pl.program_id(kv_axis)
    n_kv = pl.num_programs(kv_axis)

    @pl.when(kv == 0)
    def _init():
        m_sc[...] = jnp.full(m_sc.shape, -jnp.inf, dtype=m_sc.dtype)
        l_sc[...] = jnp.zeros(l_sc.shape, dtype=l_sc.dtype)
        acc_sc[...] = jnp.zeros(acc_sc.shape, dtype=acc_sc.dtype)

    # Fold the softmax scale into q: (tile_l, E) multiply instead of (tile_l, S).
    q = _cast(q_ref[0] * scale, compute_dtype)
    k = _cast(k_ref[0], compute_dtype)
    v = _cast(v_ref[0], compute_dtype)

    # scores = q @ k^T contracting E (no transpose materialized), f32 accumulation on MXU.
    s = lax.dot_general(q, k, (((1,), (1,)), ((), ())),
                        preferred_element_type=jnp.float32)        # (tile_l, tile_s)

    # Online-softmax update.
    m_prev = m_sc[...]
    m_new = jnp.maximum(m_prev, jnp.max(s, axis=-1, keepdims=True))
    alpha = jnp.exp(m_prev - m_new)
    p = jnp.exp(s - m_new)                                          # unnormalized probs
    l_sc[...] = alpha * l_sc[...] + jnp.sum(p, axis=-1, keepdims=True)

    # TODO(synk): nn.Dropout(attention_dropout) is implemented as inference-mode identity.

    # Post-softmax multiplicative mask applied to the unnormalized exponentials;
    # normalization by the UNMASKED row sum is deferred to the finalize step.
    if has_mask:
        p = p * mask_ref[0].astype(jnp.float32)

    acc_sc[...] = alpha * acc_sc[...] + jnp.dot(
        _cast(p, compute_dtype), v, preferred_element_type=jnp.float32)
    m_sc[...] = m_new

    @pl.when(kv == n_kv - 1)
    def _finalize():
        inv_l = pl.reciprocal(l_sc[...], approx=approx_recip)       # (tile_l, 1)
        o_ref[0] = (acc_sc[...] * inv_l).astype(o_ref.dtype)


def mask_attention(queries, keys, values, mask=None, *, scale=None,
                   tile_l=256, tile_s=512, matmul_dtype=None,
                   mask_store_dtype=jnp.bfloat16, approx_reciprocal=False,
                   vmem_budget_bytes=56 * 1024 * 1024):
    """Pallas forward of MaskAttention.

    queries: (B, L, H, E);  keys: (B, S, H, E);  values: (B, S, H, D)
    mask:    optional (B, H, L, S), multiplied with the softmaxed attention map
    returns: (B, L, H, D)
    """
    B, L, H, E = queries.shape
    _, S, _, D = values.shape
    scale_val = float(scale) if scale is not None else 1.0 / math.sqrt(E)
    has_mask = mask is not None

    compute_dtype = jnp.dtype(matmul_dtype) if matmul_dtype is not None else queries.dtype

    # Mask: reshape to (B*H, L, S) is free; ship in a narrow dtype (exact for {0,1} masks;
    # pass mask_store_dtype=None to keep full precision for arbitrary float masks).
    m_arr = None
    if has_mask:
        m_arr = mask.reshape(B * H, L, S)
        if (mask_store_dtype is not None
                and jnp.issubdtype(m_arr.dtype, jnp.floating)
                and jnp.dtype(m_arr.dtype).itemsize > jnp.dtype(mask_store_dtype).itemsize):
            m_arr = m_arr.astype(mask_store_dtype)

    # Tile selection. tile_l: sublane quantum 8. tile_s: lane quantum 128 when a mask is
    # present (tile_s is the mask block's lane dim), else 8; falls back to full S.
    tile_l_eff = _pick_tile(L, tile_l, 8)
    tile_s_eff = _pick_tile(S, tile_s, 128 if has_mask else 8)

    itemsize = jnp.dtype(queries.dtype).itemsize
    m_itemsize = jnp.dtype(m_arr.dtype).itemsize if has_mask else 0
    while True:
        est = _vmem_estimate_bytes(tile_l_eff, tile_s_eff, E, D,
                                   itemsize, itemsize, itemsize, m_itemsize,
                                   itemsize, has_mask)
        if est <= vmem_budget_bytes or tile_l_eff <= 8:
            break
        smaller = _pick_tile(L, max(8, tile_l_eff // 2), 8)
        if smaller >= tile_l_eff:
            break
        tile_l_eff = smaller

    n_l = L // tile_l_eff
    n_s = S // tile_s_eff

    scratch_shapes = [pltpu.VMEM((tile_l_eff, 1), jnp.float32),      # running max m
                      pltpu.VMEM((tile_l_eff, 1), jnp.float32),      # running sum l
                      pltpu.VMEM((tile_l_eff, D), jnp.float32)]      # output accumulator

    flat_layout = (E % 128 == 0) and (D % 128 == 0)

    if flat_layout:
        # Transpose-free: head selected via the block index on the lane axis.
        q = queries.reshape(B, L, H * E)
        k = keys.reshape(B, S, H * E)
        v = values.reshape(B, S, H * D)
        grid = (B, H, n_l, n_s)
        kv_axis = 3
        in_specs = [
            pl.BlockSpec((1, tile_l_eff, E), lambda b, h, i, j: (b, i, h)),
            pl.BlockSpec((1, tile_s_eff, E), lambda b, h, i, j: (b, j, h)),
            pl.BlockSpec((1, tile_s_eff, D), lambda b, h, i, j: (b, j, h)),
        ]
        if has_mask:
            in_specs.append(pl.BlockSpec((1, tile_l_eff, tile_s_eff),
                                         lambda b, h, i, j: (b * H + h, i, j)))
        out_specs = pl.BlockSpec((1, tile_l_eff, D), lambda b, h, i, j: (b, i, h))
        out_shape = jax.ShapeDtypeStruct((B, L, H * D), queries.dtype)
        dims = ("parallel", "parallel", "parallel", "arbitrary")
    else:
        # Head-major fallback (one XLA relayout each way) for small head dims.
        q = jnp.transpose(queries, (0, 2, 1, 3)).reshape(B * H, L, E)
        k = jnp.transpose(keys, (0, 2, 1, 3)).reshape(B * H, S, E)
        v = jnp.transpose(values, (0, 2, 1, 3)).reshape(B * H, S, D)
        grid = (B * H, n_l, n_s)
        kv_axis = 2
        in_specs = [
            pl.BlockSpec((1, tile_l_eff, E), lambda bh, i, j: (bh, i, 0)),
            pl.BlockSpec((1, tile_s_eff, E), lambda bh, i, j: (bh, j, 0)),
            pl.BlockSpec((1, tile_s_eff, D), lambda bh, i, j: (bh, j, 0)),
        ]
        if has_mask:
            in_specs.append(pl.BlockSpec((1, tile_l_eff, tile_s_eff),
                                         lambda bh, i, j: (bh, i, j)))
        out_specs = pl.BlockSpec((1, tile_l_eff, D), lambda bh, i, j: (bh, i, 0))
        out_shape = jax.ShapeDtypeStruct((B * H, L, D), queries.dtype)
        dims = ("parallel", "parallel", "arbitrary")

    operands = [q, k, v] + ([m_arr] if has_mask else [])
    vmem_limit = int(min(max(2 * est, 32 * 1024 * 1024), 100 * 1024 * 1024))

    out = pl.pallas_call(
        partial(_mask_attention_kernel, scale=scale_val, has_mask=has_mask,
                kv_axis=kv_axis, compute_dtype=compute_dtype,
                approx_recip=approx_reciprocal),
        out_shape=out_shape,
        grid_spec=pltpu.PrefetchScalarGridSpec(
            num_scalar_prefetch=0,
            grid=grid,
            in_specs=in_specs,
            out_specs=out_specs,
            scratch_shapes=scratch_shapes),
        compiler_params=pltpu.CompilerParams(
            dimension_semantics=dims,
            vmem_limit_bytes=vmem_limit),
    )(*operands)

    if flat_layout:
        return out.reshape(B, L, H, D)
    return jnp.transpose(out.reshape(B, H, L, D), (0, 2, 1, 3))


def _reference(queries, keys, values, mask, scale):
    # Pure-JAX reference reproducing the PyTorch forward (dropout in eval mode).
    B, L, H, E = queries.shape
    s = scale if scale is not None else 1.0 / math.sqrt(E)
    scores = jnp.einsum('blhe,bshe->bhls', queries, keys,
                        precision=lax.Precision.HIGHEST)
    A = jax.nn.softmax(s * scores, axis=-1)
    if mask is not None:
        A = A * mask
    return jnp.einsum('bhls,bshd->blhd', A, values,
                      precision=lax.Precision.HIGHEST)


if __name__ == "__main__":
    key = jax.random.PRNGKey(0)
    kq, kk, kv_, km = jax.random.split(key, 4)

    # Module-consistent shapes: B, L (query len), S (key len), H heads, E, D.
    B, L, S, H, E, D = 2, 16, 16, 4, 32, 32
    q = jax.random.normal(kq, (B, L, H, E), dtype=jnp.float32)
    k = jax.random.normal(kk, (B, S, H, E), dtype=jnp.float32)
    v = jax.random.normal(kv_, (B, S, H, D), dtype=jnp.float32)
    mask = (jax.random.uniform(km, (B, H, L, S)) > 0.25).astype(jnp.float32)

    # 1) default path (small head dims -> head-major layout), masked.
    out = jax.block_until_ready(mask_attention(q, k, v, mask))
    ref = _reference(q, k, v, mask, None)
    assert out.shape == (B, L, H, D)
    assert jnp.allclose(out, ref, atol=5e-4, rtol=5e-4), "mismatch (masked)"

    # 2) mask=None path.
    out_nm = jax.block_until_ready(mask_attention(q, k, v))
    ref_nm = _reference(q, k, v, None, None)
    assert jnp.allclose(out_nm, ref_nm, atol=5e-4, rtol=5e-4), "mismatch (no mask)"

    # 3) longer S -> multiple KV tiles (online-softmax accumulator path), masked.
    S3 = 256
    k3 = jax.random.normal(kk, (B, S3, H, E), dtype=jnp.float32)
    v3 = jax.random.normal(kv_, (B, S3, H, D), dtype=jnp.float32)
    m3 = (jax.random.uniform(km, (B, H, L, S3)) > 0.25).astype(jnp.float32)
    out3 = jax.block_until_ready(mask_attention(q, k3, v3, m3, tile_s=128))
    ref3 = _reference(q, k3, v3, m3, None)
    assert jnp.allclose(out3, ref3, atol=5e-4, rtol=5e-4), "mismatch (KV-tiled)"

    # 4) lane-aligned head dims (E=D=128) -> transpose-free flat layout, KV-tiled.
    B4, H4, E4, D4 = 1, 2, 128, 128
    q4 = jax.random.normal(kq, (B4, L, H4, E4), dtype=jnp.float32)
    k4 = jax.random.normal(kk, (B4, S3, H4, E4), dtype=jnp.float32)
    v4 = jax.random.normal(kv_, (B4, S3, H4, D4), dtype=jnp.float32)
    m4 = (jax.random.uniform(km, (B4, H4, L, S3)) > 0.25).astype(jnp.float32)
    out4 = jax.block_until_ready(mask_attention(q4, k4, v4, m4, tile_s=128))
    ref4 = _reference(q4, k4, v4, m4, None)
    assert out4.shape == (B4, L, H4, D4)
    assert jnp.allclose(out4, ref4, atol=5e-4, rtol=5e-4), "mismatch (flat layout)"

    # 5) optional fast paths: approximate EUP reciprocal and bf16 MXU (looser tolerances).
    out5 = jax.block_until_ready(mask_attention(q, k, v, mask, approx_reciprocal=True))
    assert jnp.allclose(out5, ref, atol=5e-2, rtol=5e-2), "mismatch (approx reciprocal)"
    out6 = jax.block_until_ready(mask_attention(q, k, v, mask, matmul_dtype=jnp.bfloat16))
    assert jnp.allclose(out6, ref, atol=1e-1, rtol=1e-1), "mismatch (bf16 matmul)"

    print("KERNEL_OK")
</pallas_src>

<mosaic_0001>
module attributes {stable_mosaic.version = 11 : i64} {
  func.func @_mask_attention_kernel(%arg0: i32, %arg1: i32, %arg2: i32, %arg3: memref<1x16x32xf32, #tpu.memory_space<vmem>>, %arg4: memref<1x16x32xf32, #tpu.memory_space<vmem>>, %arg5: memref<1x16x32xf32, #tpu.memory_space<vmem>>, %arg6: memref<1x16x16xbf16, #tpu.memory_space<vmem>>, %arg7: memref<1x16x32xf32, #tpu.memory_space<vmem>>, %arg8: memref<16x1xf32, #tpu.memory_space<vmem>>, %arg9: memref<16x1xf32, #tpu.memory_space<vmem>>, %arg10: memref<16x32xf32, #tpu.memory_space<vmem>>) attributes {dimension_semantics = [#tpu.dimension_semantics<parallel>, #tpu.dimension_semantics<parallel>, #tpu.dimension_semantics<arbitrary>], iteration_bounds = array<i64: 8, 1, 1>, scalar_prefetch = 0 : i64, scratch_operands = 3 : i64, tpu.core_type = #tpu.core_type<tc>, window_params = [{transform_indices = @transform_0, window_bounds = array<i64: 1, 16, 32>}, {transform_indices = @transform_1, window_bounds = array<i64: 1, 16, 32>}, {transform_indices = @transform_2, window_bounds = array<i64: 1, 16, 32>}, {transform_indices = @transform_3, window_bounds = array<i64: 1, 16, 16>}, {transform_indices = @transform_4, window_bounds = array<i64: 1, 16, 32>}]} {
    %c0_i32 = arith.constant 0 : i32
    %0 = arith.cmpi eq, %arg2, %c0_i32 : i32
    %1 = arith.extui %0 : i1 to i32
    %c0_i32_0 = arith.constant 0 : i32
    %2 = arith.cmpi ne, %1, %c0_i32_0 : i32
    scf.if %2 {
      %cst_30 = arith.constant 0xFF800000 : f32
      %41 = vector.broadcast %cst_30 : f32 to vector<16x1xf32>
      %c0_31 = arith.constant 0 : index
      %c0_32 = arith.constant 0 : index
      %42 = vector.load %arg8[%c0_31, %c0_32] : memref<16x1xf32, #tpu.memory_space<vmem>>, vector<16x1xf32>
      tpu.vector_store %arg8[%c0_31, %c0_32], %41 {strides = array<i32>} : memref<16x1xf32, #tpu.memory_space<vmem>>, vector<16x1xf32>,
      %cst_33 = arith.constant 0.000000e+00 : f32
      %43 = vector.broadcast %cst_33 : f32 to vector<16x1xf32>
      %c0_34 = arith.constant 0 : index
      %c0_35 = arith.constant 0 : index
      %44 = vector.load %arg9[%c0_34, %c0_35] : memref<16x1xf32, #tpu.memory_space<vmem>>, vector<16x1xf32>
      tpu.vector_store %arg9[%c0_34, %c0_35], %43 {strides = array<i32>} : memref<16x1xf32, #tpu.memory_space<vmem>>, vector<16x1xf32>,
      %cst_36 = arith.constant 0.000000e+00 : f32
      %45 = vector.broadcast %cst_36 : f32 to vector<16x32xf32>
      %c0_37 = arith.constant 0 : index
      %c0_38 = arith.constant 0 : index
      %46 = vector.load %arg10[%c0_37, %c0_38] : memref<16x32xf32, #tpu.memory_space<vmem>>, vector<16x32xf32>
      tpu.vector_store %arg10[%c0_37, %c0_38], %45 {strides = array<i32>} : memref<16x32xf32, #tpu.memory_space<vmem>>, vector<16x32xf32>,
    } else {
    }
    %c0 = arith.constant 0 : index
    %c0_1 = arith.constant 0 : index
    %c0_2 = arith.constant 0 : index
    %3 = vector.load %arg3[%c0, %c0_1, %c0_2] : memref<1x16x32xf32, #tpu.memory_space<vmem>>, vector<1x16x32xf32>
    %4 = vector.shape_cast %3 : vector<1x16x32xf32> to vector<16x32xf32>
    %cst = arith.constant 0.176776692 : f32
    %5 = vector.broadcast %cst : f32 to vector<16x32xf32>
    %6 = arith.mulf %4, %5 : vector<16x32xf32>
    %c0_3 = arith.constant 0 : index
    %c0_4 = arith.constant 0 : index
    %c0_5 = arith.constant 0 : index
    %7 = vector.load %arg4[%c0_3, %c0_4, %c0_5] : memref<1x16x32xf32, #tpu.memory_space<vmem>>, vector<1x16x32xf32>
    %8 = vector.shape_cast %7 : vector<1x16x32xf32> to vector<16x32xf32>
    %c0_6 = arith.constant 0 : index
    %c0_7 = arith.constant 0 : index
    %c0_8 = arith.constant 0 : index
    %9 = vector.load %arg5[%c0_6, %c0_7, %c0_8] : memref<1x16x32xf32, #tpu.memory_space<vmem>>, vector<1x16x32xf32>
    %10 = vector.shape_cast %9 : vector<1x16x32xf32> to vector<16x32xf32>
    %cst_9 = arith.constant dense<0.000000e+00> : vector<16x16xf32>
    %11 = tpu.matmul %6, %8, %cst_9 {dimension_numbers = #tpu.dot_dimension_numbers<[1], [1], [0], [0], [0, 0, 1, 0], [], []>} : vector<16x32xf32>, vector<16x32xf32>, vector<16x16xf32> -> vector<16x16xf32>
    %c0_10 = arith.constant 0 : index
    %c0_11 = arith.constant 0 : index
    %12 = vector.load %arg8[%c0_10, %c0_11] : memref<16x1xf32, #tpu.memory_space<vmem>>, vector<16x1xf32>
    %cst_12 = arith.constant dense<0xFF800000> : vector<16xf32>
    %13 = vector.multi_reduction <maximumf>, %11, %cst_12 [1] : vector<16x16xf32> to vector<16xf32>
    %14 = vector.shape_cast %13 : vector<16xf32> to vector<16x1xf32>
    %15 = arith.maximumf %12, %14 : vector<16x1xf32>
    %16 = arith.subf %12, %15 : vector<16x1xf32>
    %17 = math.exp %16 : vector<16x1xf32>
    %18 = vector.broadcast %15 : vector<16x1xf32> to vector<16x16xf32>
    %19 = arith.subf %11, %18 : vector<16x16xf32>
    %20 = math.exp %19 : vector<16x16xf32>
    %c0_13 = arith.constant 0 : index
    %c0_14 = arith.constant 0 : index
    %21 = vector.load %arg9[%c0_13, %c0_14] : memref<16x1xf32, #tpu.memory_space<vmem>>, vector<16x1xf32>
    %22 = arith.mulf %17, %21 : vector<16x1xf32>
    %cst_15 = arith.constant dense<0.000000e+00> : vector<16xf32>
    %23 = vector.multi_reduction <add>, %20, %cst_15 [1] : vector<16x16xf32> to vector<16xf32>
    %24 = vector.shape_cast %23 : vector<16xf32> to vector<16x1xf32>
    %25 = arith.addf %22, %24 : vector<16x1xf32>
    %c0_16 = arith.constant 0 : index
    %c0_17 = arith.constant 0 : index
    %26 = vector.load %arg9[%c0_16, %c0_17] : memref<16x1xf32, #tpu.memory_space<vmem>>, vector<16x1xf32>
    tpu.vector_store %arg9[%c0_16, %c0_17], %25 {strides = array<i32>} : memref<16x1xf32, #tpu.memory_space<vmem>>, vector<16x1xf32>,
    %c0_18 = arith.constant 0 : index
    %c0_19 = arith.constant 0 : index
    %c0_20 = arith.constant 0 : index
    %27 = vector.load %arg6[%c0_18, %c0_19, %c0_20] : memref<1x16x16xbf16, #tpu.memory_space<vmem>>, vector<1x16x16xbf16>
    %28 = vector.shape_cast %27 : vector<1x16x16xbf16> to vector<16x16xbf16>
    %29 = arith.extf %28 : vector<16x16xbf16> to vector<16x16xf32>
    %30 = arith.mulf %20, %29 : vector<16x16xf32>
    %c0_21 = arith.constant 0 : index
    %c0_22 = arith.constant 0 : index
    %31 = vector.load %arg10[%c0_21, %c0_22] : memref<16x32xf32, #tpu.memory_space<vmem>>, vector<16x32xf32>
    %32 = vector.broadcast %17 : vector<16x1xf32> to vector<16x32xf32>
    %33 = arith.mulf %32, %31 : vector<16x32xf32>
    %cst_23 = arith.constant dense<0.000000e+00> : vector<16x32xf32>
    %34 = tpu.matmul %30, %10, %cst_23 {dimension_numbers = #tpu.dot_dimension_numbers<[1], [0], [0], [1], [0, 0, 1, 1], [], []>} : vector<16x16xf32>, vector<16x32xf32>, vector<16x32xf32> -> vector<16x32xf32>
    %35 = arith.addf %33, %34 : vector<16x32xf32>
    %c0_24 = arith.constant 0 : index
    %c0_25 = arith.constant 0 : index
    %36 = vector.load %arg10[%c0_24, %c0_25] : memref<16x32xf32, #tpu.memory_space<vmem>>, vector<16x32xf32>
    tpu.vector_store %arg10[%c0_24, %c0_25], %35 {strides = array<i32>} : memref<16x32xf32, #tpu.memory_space<vmem>>, vector<16x32xf32>,
    %c0_26 = arith.constant 0 : index
    %c0_27 = arith.constant 0 : index
    %37 = vector.load %arg8[%c0_26, %c0_27] : memref<16x1xf32, #tpu.memory_space<vmem>>, vector<16x1xf32>
    tpu.vector_store %arg8[%c0_26, %c0_27], %15 {strides = array<i32>} : memref<16x1xf32, #tpu.memory_space<vmem>>, vector<16x1xf32>,
    %c0_i32_28 = arith.constant 0 : i32
    %38 = arith.cmpi eq, %arg2, %c0_i32_28 : i32
    %39 = arith.extui %38 : i1 to i32
    %c0_i32_29 = arith.constant 0 : i32
    %40 = arith.cmpi ne, %39, %c0_i32_29 : i32
    scf.if %40 {
      %c0_30 = arith.constant 0 : index
      %c0_31 = arith.constant 0 : index
      %41 = vector.load %arg9[%c0_30, %c0_31] : memref<16x1xf32, #tpu.memory_space<vmem>>, vector<16x1xf32>
      %42 = tpu.reciprocal %41 : vector<16x1xf32> -> vector<16x1xf32>
      %c0_32 = arith.constant 0 : index
      %c0_33 = arith.constant 0 : index
      %43 = vector.load %arg10[%c0_32, %c0_33] : memref<16x32xf32, #tpu.memory_space<vmem>>, vector<16x32xf32>
      %44 = vector.broadcast %42 : vector<16x1xf32> to vector<16x32xf32>
      %45 = arith.mulf %43, %44 : vector<16x32xf32>
      %c0_34 = arith.constant 0 : index
      %c0_35 = arith.constant 0 : index
      %c0_36 = arith.constant 0 : index
      %46 = vector.load %arg7[%c0_34, %c0_35, %c0_36] : memref<1x16x32xf32, #tpu.memory_space<vmem>>, vector<1x16x32xf32>
      %47 = vector.shape_cast %46 : vector<1x16x32xf32> to vector<16x32xf32>
      %48 = vector.shape_cast %45 : vector<16x32xf32> to vector<1x16x32xf32>
      tpu.vector_store %arg7[%c0_34, %c0_35, %c0_36], %48 {strides = array<i32>} : memref<1x16x32xf32, #tpu.memory_space<vmem>>, vector<1x16x32xf32>,
    } else {
    }
    return
  }
  func.func @transform_0(%arg0: i32, %arg1: i32, %arg2: i32) -> (i32, i32, i32) {
    %c0_i32 = arith.constant 0 : i32
    %c0_i32_0 = arith.constant 0 : i32
    return %arg0, %arg1, %c0_i32 : i32, i32, i32
  }
  func.func @transform_1(%arg0: i32, %arg1: i32, %arg2: i32) -> (i32, i32, i32) {
    %c0_i32 = arith.constant 0 : i32
    %c0_i32_0 = arith.constant 0 : i32
    return %arg0, %arg2, %c0_i32 : i32, i32, i32
  }
  func.func @transform_2(%arg0: i32, %arg1: i32, %arg2: i32) -> (i32, i32, i32) {
    %c0_i32 = arith.constant 0 : i32
    %c0_i32_0 = arith.constant 0 : i32
    return %arg0, %arg2, %c0_i32 : i32, i32, i32
  }
  func.func @transform_3(%arg0: i32, %arg1: i32, %arg2: i32) -> (i32, i32, i32) {
    %c0_i32 = arith.constant 0 : i32
    return %arg0, %arg1, %arg2 : i32, i32, i32
  }
  func.func @transform_4(%arg0: i32, %arg1: i32, %arg2: i32) -> (i32, i32, i32) {
    %c0_i32 = arith.constant 0 : i32
    %c0_i32_0 = arith.constant 0 : i32
    return %arg0, %arg1, %c0_i32 : i32, i32, i32
  }
}

</mosaic_0001>

<bundles_post_ra>
// kernel: tpu_custom_call.1
= control target key start
LH: loop header
LB: loop body
LE: loop exit
PB: predicated region body
PF: predicated region fallthrough
CT: control target
= control target key end

     0   :  { %s1624_s0 = inlined_call_operand.hbm [shape: f32[8,16,32], index: 0, kind: input, shape index: {}]   ;;  %s1625_s1 = inlined_call_operand.hbm [shape: f32[8,16,32], index: 1, kind: input, shape index: {}]   ;;  %s1626_s2 = inlined_call_operand.hbm [shape: f32[8,16,32], index: 2, kind: input, shape index: {}]   ;;  %s1627_s3 = inlined_call_operand.hbm [shape: bf16[8,16,16], index: 3, kind: input, shape index: {}]   ;;  %s1628_s4 = inlined_call_operand.hbm [shape: f32[8,16,32], index: 4, kind: output, shape index: {}]  }
   0x1   :  { %1639 = sst [smem:[#allocation23_spill]] %s1624_s0 }
   0x2   :  { %1640 = sst [smem:[#allocation24_spill]] %s1625_s1 }
   0x3   :  { %9 = vsyncpa [#allocation6], 0 }
   0x4   :  { %11 = vsyncpa [#allocation6 + $0x1], 0 }
   0x5   :  { %12 = vsyncpa [#allocation9], 0 }
   0x6   :  { %14 = vsyncpa [#allocation9 + $0x1], 0 }
   0x7   :  { %15 = vsyncpa [#allocation12], 0 }
   0x8   :  { %17 = vsyncpa [#allocation12 + $0x1], 0 }
   0x9   :  { %18 = vsyncpa [#allocation7], 0 }
   0xa   :  { %20 = vsyncpa [#allocation7 + $0x1], 0  ;;  %s1271_s15 = smov 0   ;;  %s1273_s16 = smov 0  }
   0xb   :  { %s1275_s17 = smov 0   ;;  %s1277_s18 = smov 0  }
   0xc   :  { %s1279_s19 = smov 0   ;;  %s1281_s20 = smov 0  }
   0xd LB: > { %1641 = sst [smem:[#allocation18_spill]] %s1210_s15  ;;  %s1302_s21 = sadd.s32 4294967295, %s1230_s20   ;;  %s1230_s20 = sphi %s1281_s20, %s26_s20   ;;  %s1226_s19 = sphi %s1279_s19, %s1671_s19   ;;  %s1222_s18 = sphi %s1277_s18, %s1670_s18   ;;  %s1218_s17 = sphi %s1275_s17, %s1666_s17   ;;  %s1214_s16 = sphi %s1273_s16, %s1669_s16   ;;  %s1210_s15 = sphi %s1271_s15, %s1668_s15  }
   0xe   : > { %1642 = sst [smem:[#allocation19_spill]] %s1218_s17  ;;  %s847_s22 = sadd.s32 4294967294, %s1230_s20  }
   0xf   : > { %s45_s23 = sadd.s32 1, %s1226_s19  ;;  %s54_s24 = sadd.s32 1, %s1218_s17 }
  0x10   : > { %p47_p0 = scmp.ge.s32.totalorder %s45_s23, 8  ;;  %p61_p1 = scmp.ne.s32.totalorder %s1218_s17, %s1214_s16 }
  0x11   : > { %p62_p2 = scmp.eq.s32.totalorder %s1230_s20, 0  ;;  %p67_p3 = scmp.ne.s32.totalorder %s1214_s16, %s1210_s15 }
  0x12   : > { %s1673_s23 = smov (%p47_p0, %s45_s23), 0  ;;  %p68_p5 = scmp.eq.s32.totalorder %s1302_s21, 0 }
  0x13   : > { %1643 = sst [smem:[#allocation20_spill]] %s1673_s23  ;;  %p1314_p4 = por %p62_p2, %p61_p1 }
  0x14   : > { %s49_s26 = ssub.s32 %s1226_s19, %s1673_s23  ;;  %p179_p6 = scmp.eq.s32.totalorder %s1302_s21, 7 }
  0x15   : > { %p52_p7 = scmp.eq.s32.totalorder %s49_s26, 0  ;;  %p1322_p8 = por %p68_p5, %p67_p3 }
  0x16   : > { %p1326_p9 = por %p179_p6, %p61_p1  ;;  %p185_p10 = scmp.eq.s32.totalorder %s847_s22, 7 }
  0x17   : > { %s1645_s27 = scalar_select %p1322_p8, 1, 0 }
  0x18   : > { %s1646_s28 = scalar_select %p1326_p9, 1, 0 }
  0x19   : > { %s1331_s29 = scalar_select %p52_p7, %s1218_s17, %s54_s24  }
  0x1a   : > { %p1333_p11 = por %p185_p10, %p67_p3  ;;  %p947_p12 = scmp.lt.s32.totalorder %s1230_s20, 8 }
  0x1b   : > { %1647 = sst [smem:[#allocation21_spill]] %s1331_s29  ;;  %s1339_s5 = sand.u32 1, %s1218_s17  }
  0x1c   : > { %s1648_s30 = scalar_select %p1333_p11, 1, 0 }
  0x1d   : > { %s1342_s6 = sshll.u32 %s1339_s5, 4  ;;  %s1345_s7 = sshll.u32 %s1226_s19, 8 }
  0x1e   : > { %1649 = sst [smem:[#allocation22_spill]] %s1648_s30  ;;  %p1349_p13 = pnand %p947_p12, %p1314_p4 }
  0x1f   : > { %s228_s9 = sand.u32 1, %s1230_s20   ;;  %s1651_s1 = sld [smem:[#allocation24_spill]] }
  0x20   : > { %s232_s13 = scalar_lea.vmem [#allocation8], %s1342_s6  ;;  %s1365_s22 = scalar_lea.sflag [#allocation9], %s228_s9 }
  0x21   : > { %s241_s14 = sshll.u32 %s232_s13, 4  ;;  %p1371_p3 = pneg %p1349_p13  ;;  %s1362_s14 = int_to_ptr.vmem [resolvable:$true] %s241_s14 }
  0x25   : > { %s1358_s12 = scalar_lea.hbm %s1651_s1, %s1345_s7  ;;  %s1025_s11 = scalar_lea.hbm %s1651_s1, 2048 }
  0x26   : > { %s1020_s24 = scalar_lea.hbm %s1358_s12, 256  ;;  %p1026_p6 = scmp.lt.u32.totalorder %s1358_s12, %s1651_s1 }
  0x27   : > { %p1021_p2 = scmp.ne.s32.totalorder %s1358_s12, %s1020_s24  ;;  %p1027_p7 = scmp.lt.u32.totalorder %s1025_s11, %s1020_s24 }
  0x28   : > { %p1029_p12 = scmp.lt.u32.totalorder %s1020_s24, %s1358_s12 }
  0x29   : > { %p1023_p4 = pnand %p1371_p3, %p1021_p2  ;;  %p1028_p10 = por %p1027_p7, %p1026_p6 }
  0x2b   : > { %p1024_p5 = pneg %p1023_p4  ;;  %p1030_p0 = por %p1029_p12, %p1028_p10 }
  0x2d   : > { %p1031_p1 = pnand %p1030_p0, %p1024_p5 }
  0x2f   : > { %1034 = shalt.err (!%p1031_p1)
}
  0x30   : > { %s1035_s9 = scalar_lea.vmem %s1362_s14, 256  ;;  %s1232_s26 = smov [#allocation8]  }
  0x31   : > { %p1036_p2 = scmp.ne.s32.totalorder %s1362_s14, %s1035_s9  ;;  %s1040_s10 = sshll.u32 %s1232_s26, 4  ;;  %s1041_s10 = int_to_ptr.vmem [resolvable:$false] %s1040_s10 }
  0x32   : > { %s1042_s23 = scalar_lea.vmem %s1041_s10, 512  ;;  %p1043_p9 = scmp.lt.s32.totalorder %s1362_s14, %s1041_s10 }
  0x33   : > { %p1038_p4 = pnand %p1036_p2, %p1371_p3  ;;  %p1044_p8 = scmp.lt.s32.totalorder %s1042_s23, %s1035_s9 }
  0x35   : > { %p1039_p11 = pneg %p1038_p4  ;;  %p1045_p6 = por %p1044_p8, %p1043_p9 }
  0x37   : > { %p1046_p7 = pnand %p1045_p6, %p1039_p11 }
  0x39   : > { %1049 = shalt.err (!%p1046_p7)
}
  0x3a   : > { %s1632_s24 = smov 128   ;;  %s1634_s11 = smov 8  }
  0x3b   : > { %936 = dma.hbm_to_vmem [thread:$0]  (!%p1349_p13), %s1358_s12, 256, %s1362_s14, %s1365_s22, %s1632_s24, %s1632_s24, %s1634_s11  }
  0x3c   : > { %p1653_p8 = scmp.lt.s32.totalorder %s1230_s20, 9  ;;  %p1654_p9 = scmp.ge.s32.totalorder %s1230_s20, 1 }
  0x3d   : > { %s1656_s0 = sld [smem:[#allocation23_spill]]  ;;  %s209_s23 = scalar_lea.vmem [#allocation5], %s1342_s6 }
  0x3e   : > { %p1402_p11 = pnand %p1654_p9, %p1653_p8  ;;  %s218_s1 = sshll.u32 %s209_s23, 4  ;;  %s1413_s1 = int_to_ptr.vmem [resolvable:$true] %s218_s1 }
  0x3f   : > { %s1419_s24 = scalar_lea.hbm %s1626_s2, %s1345_s7  ;;  %s206_s11 = scalar_lea.sflag [#allocation6], %s1339_s5 }
  0x40   : > { %s1655_s13 = scalar_select %p1402_p11, 1, 0 }
  0x43   : > { %s1410_s10 = scalar_lea.hbm %s1656_s0, %s1345_s7  ;;  %s1055_s17 = scalar_lea.hbm %s1656_s0, 2048 }
  0x44   : > { %s1050_s29 = scalar_lea.hbm %s1410_s10, 256  ;;  %p1056_p10 = scmp.lt.u32.totalorder %s1410_s10, %s1656_s0 }
  0x45   : > { %p1051_p0 = scmp.ne.s32.totalorder %s1410_s10, %s1050_s29  ;;  %p1057_p12 = scmp.lt.u32.totalorder %s1055_s17, %s1050_s29 }
  0x46   : > { %p1059_p4 = scmp.lt.u32.totalorder %s1050_s29, %s1410_s10 }
  0x47   : > { %p1053_p1 = pnand %p1051_p0, %p1371_p3  ;;  %p1058_p2 = por %p1057_p12, %p1056_p10 }
  0x49   : > { %p1054_p5 = pneg %p1053_p1  ;;  %p1060_p6 = por %p1059_p4, %p1058_p2 }
  0x4b   : > { %p1061_p7 = pnand %p1060_p6, %p1054_p5 }
  0x4d   : > { %1064 = shalt.err (!%p1061_p7)
}
  0x4e   : > { %s1065_s7 = scalar_lea.vmem %s1413_s1, 256  ;;  %s1235_s23 = smov [#allocation5]  }
  0x4f   : > { %p1066_p8 = scmp.ne.s32.totalorder %s1413_s1, %s1065_s7  ;;  %s1070_s12 = sshll.u32 %s1235_s23, 4  ;;  %s1071_s12 = int_to_ptr.vmem [resolvable:$false] %s1070_s12 }
  0x50   : > { %s1072_s15 = scalar_lea.vmem %s1071_s12, 512  ;;  %p1073_p1 = scmp.lt.s32.totalorder %s1413_s1, %s1071_s12 }
  0x51   : > { %p1068_p9 = pnand %p1066_p8, %p1371_p3  ;;  %p1074_p11 = scmp.lt.s32.totalorder %s1072_s15, %s1065_s7 }
  0x53   : > { %p1069_p0 = pneg %p1068_p9  ;;  %p1075_p10 = por %p1074_p11, %p1073_p1 }
  0x55   : > { %p1076_p12 = pnand %p1075_p10, %p1069_p0 }
  0x57   : > { %1079 = shalt.err (!%p1076_p12)
}
  0x58   : > { %s1657_s17 = smov 8   ;;  %s1658_s29 = smov 128  }
  0x59   : > { %933 = dma.hbm_to_vmem [thread:$0]  (!%p1349_p13), %s1410_s10, 256, %s1413_s1, %s206_s11, %s1658_s29, %s1658_s29, %s1657_s17  }
  0x5a   : > { %s255_s30 = scalar_lea.vmem [#allocation10], %s1342_s6  ;;  %s859_s9 = sshll.u32 %s1339_s5, 3 }
  0x5b   : > { %s264_s14 = sshll.u32 %s255_s30, 4  ;;  %s1080_s26 = scalar_lea.hbm %s1419_s24, 256  ;;  %s1449_s14 = int_to_ptr.vmem [resolvable:$true] %s264_s14 }
  0x5c   : > { %p1081_p11 = scmp.ne.s32.totalorder %s1419_s24, %s1080_s26  ;;  %s1085_s12 = scalar_lea.hbm %s1626_s2, 2048 }
  0x5d   : > { %p1086_p4 = scmp.lt.u32.totalorder %s1419_s24, %s1626_s2  ;;  %p1087_p6 = scmp.lt.u32.totalorder %s1085_s12, %s1080_s26 }
  0x5e   : > { %p1083_p5 = pnand %p1081_p11, %p1371_p3  ;;  %p1089_p8 = scmp.lt.u32.totalorder %s1080_s26, %s1419_s24 }
  0x5f   : > { %p1088_p7 = por %p1087_p6, %p1086_p4 }
  0x60   : > { %p1084_p2 = pneg %p1083_p5 }
  0x61   : > { %p1090_p9 = por %p1089_p8, %p1088_p7 }
  0x63   : > { %p1091_p0 = pnand %p1090_p9, %p1084_p2 }
  0x65   : > { %1094 = shalt.err (!%p1091_p0)
}
  0x66   : > { %s1095_s1 = scalar_lea.vmem %s1449_s14, 256  ;;  %s1236_s6 = smov [#allocation10]  }
  0x67   : > { %p1096_p1 = scmp.ne.s32.totalorder %s1449_s14, %s1095_s1  ;;  %s1100_s11 = sshll.u32 %s1236_s6, 4  ;;  %s1101_s11 = int_to_ptr.vmem [resolvable:$false] %s1100_s11 }
  0x68   : > { %s1102_s0 = scalar_lea.vmem %s1101_s11, 512  ;;  %p1103_p11 = scmp.lt.s32.totalorder %s1449_s14, %s1101_s11 }
  0x69   : > { %p1098_p10 = pnand %p1096_p1, %p1371_p3  ;;  %p1104_p5 = scmp.lt.s32.totalorder %s1102_s0, %s1095_s1 }
  0x6b   : > { %p1099_p12 = pneg %p1098_p10  ;;  %p1105_p4 = por %p1104_p5, %p1103_p11 }
  0x6d   : > { %p1106_p6 = pnand %p1105_p4, %p1099_p12 }
  0x6f   : > { %1109 = shalt.err (!%p1106_p6)
}
  0x70   : > { %939 = dma.hbm_to_vmem [thread:$0]  (!%p1349_p13), %s1419_s24, 256, %s1449_s14, %s1365_s22, %s1658_s29, %s1658_s29, %s1657_s17  }
  0x71   : > { %s882_s10 = sshll.u32 %s1226_s19, 7  ;;  %s278_s23 = scalar_lea.vmem [#allocation11], %s859_s9 }
  0x72   : > { %s1481_s7 = scalar_lea.hbm %s1627_s3, %s882_s10  ;;  %s288_s12 = sshll.u32 %s278_s23, 4  ;;  %s1485_s12 = int_to_ptr.vmem [resolvable:$true] %s288_s12 }
  0x73   : > { %s275_s15 = scalar_lea.sflag [#allocation12], %s1339_s5  ;;  %s1110_s1 = scalar_lea.hbm %s1481_s7, 128 }
  0x74   : > { %p1111_p2 = scmp.ne.s32.totalorder %s1481_s7, %s1110_s1  ;;  %s1115_s17 = scalar_lea.hbm %s1627_s3, 1024 }
  0x75   : > { %p1116_p9 = scmp.lt.u32.totalorder %s1481_s7, %s1627_s3  ;;  %p1117_p0 = scmp.lt.u32.totalorder %s1115_s17, %s1110_s1 }
  0x76   : > { %p1113_p7 = pnand %p1111_p2, %p1371_p3  ;;  %p1119_p10 = scmp.lt.u32.totalorder %s1110_s1, %s1481_s7 }
  0x77   : > { %p1118_p1 = por %p1117_p0, %p1116_p9 }
  0x78   : > { %p1114_p8 = pneg %p1113_p7 }
  0x79   : > { %p1120_p12 = por %p1119_p10, %p1118_p1 }
  0x7b   : > { %p1121_p11 = pnand %p1120_p12, %p1114_p8 }
  0x7d   : > { %1124 = shalt.err (!%p1121_p11)
}
  0x7e   : > { %s1125_s9 = scalar_lea.vmem %s1485_s12, 128  ;;  %s1237_s6 = smov [#allocation11]  }
  0x7f   : > { %p1126_p5 = scmp.ne.s32.totalorder %s1485_s12, %s1125_s9  ;;  %s1130_s11 = sshll.u32 %s1237_s6, 4  ;;  %s1131_s11 = int_to_ptr.vmem [resolvable:$false] %s1130_s11 }
  0x80   : > { %s1132_s0 = scalar_lea.vmem %s1131_s11, 256  ;;  %p1133_p2 = scmp.lt.s32.totalorder %s1485_s12, %s1131_s11 }
  0x81   : > { %p1128_p4 = pnand %p1126_p5, %p1371_p3  ;;  %p1134_p7 = scmp.lt.s32.totalorder %s1132_s0, %s1125_s9 }
  0x83   : > { %p1129_p6 = pneg %p1128_p4  ;;  %p1135_p9 = por %p1134_p7, %p1133_p2 }
  0x85   : > { %p1136_p0 = pnand %p1135_p9, %p1129_p6 }
  0x87   : > { %1139 = shalt.err (!%p1136_p0)
}
  0x88   : > { %s1238_s10 = smov 64   ;;  %s1239_s30 = smov 4  }
  0x89   : > { %942 = dma.hbm_to_vmem [thread:$0]  (!%p1349_p13), %s1481_s7, 128, %s1485_s12, %s275_s15, %s1238_s10, %s1238_s10, %s1239_s30  }
  0x8a   : > { %p1659_p3 = scmp.ne.s32.totalorder %s1655_s13, 0 }
  0x8b   : > { %s1514_s25 = sand.u32 (!%p1659_p3), 1, %s1214_s16   ;;  %p1660_p8 = scmp.ne.s32.totalorder (!%p1659_p3), %s1645_s27, 0 }
  0x8c   : > { %300 = sbr.rel (%p1659_p3) target bundleno = 979 (0x3d3), region = 36  ;;  %s1517_s26 = sshll.u32 (!%p1659_p3), %s1514_s25, 4 }
  0x8d   : > { %s303_s23 = scalar_lea.sflag (!%p1659_p3), [#allocation6], %s1514_s25  ;;  %s306_s1 = scalar_lea.vmem (!%p1659_p3), [#allocation5], %s1517_s26 }
  0x93   : > { %1193 = dma.done.wait (%p1660_p8), %s303_s23, 256  }
  0x94   : > { %1195 = vsyncadd (%p1660_p8), %s303_s23, 4294967040  ;;  %s311_s5 = sand.u32 1, %s1302_s21   ;;  %s315_s13 = scalar_lea.vmem [#allocation8], %s1517_s26 }
  0x95   : > { %s312_s8 = scalar_lea.sflag [#allocation9], %s311_s5 }
  0x96   : > { %1197 = dma.done.wait (%p1660_p8), %s312_s8, 512  }
  0x97   : > { %1199 = vsyncadd (%p1660_p8), %s312_s8, 4294966784  ;;  %s866_s7 = sshll.u32 %s1514_s25, 3  ;;  %s324_s12 = scalar_lea.vmem [#allocation10], %s1517_s26 }
  0x98   : > { %s330_s15 = scalar_lea.sflag [#allocation12], %s1514_s25  ;;  %s1534_s22 = scalar_lea.vmem [#allocation11], %s866_s7 }
  0x99   : > { %1201 = dma.done.wait (%p1660_p8), %s330_s15, 128  }
  0x9a   : > { %1203 = vsyncadd (%p1660_p8), %s330_s15, 4294967168  ;;  %vm387_vm0 = vcmask 261120   ;;  %v394_v0 = vld [vmem:[%s315_s13] sm:$0xff]  ;;  %v395_v1 = vld [vmem:[%s315_s13 + $0x8] sm:$0xff]  ;;  %vm382_vm2 = vcmask 7168   ;;  %v1240_v7 = vmov -inf  }
  0x9b   : > { %vm911_vm1 = vmpackc.low %vm387_vm0, %vm387_vm0  ;;  %v390_v2 = vld [vmem:[%s306_s1] sm:$0xff]  ;;  %v910_v3 = vpack.c.bf16 %v395_v1, %v394_v0  ;;  %v391_v5 = vld [vmem:[%s306_s1 + $0x8] sm:$0xff]  ;;  %383 = vst.msk [vmem:[#allocation2] sm:$0xff] %vm382_vm2, %v1240_v7  ;;  %vm488_vm3 = vcmask 130048   ;;  %v1241_v12 = vmov 0   ;;  %v1242_v13 = vmov 0.0  }
  0x9c   : > { %v392_v4 = vmul.f32 0.17677669, %v390_v2  ;;  %v393_v6 = vmul.f32 0.17677669, %v391_v5  ;;  %384 = vst.msk [vmem:[#allocation2 + $0x8] sm:$0xff] %vm382_vm2, %v1240_v7  ;;  %1006 = vset.pattern.permute.xlu1 %v1241_v12  ;;  %1007 = vset.pattern.permute.xlu0 %v1241_v12  ;;  %385 = vst.msk [vmem:[#allocation3] sm:$0xff] %vm382_vm2, %v1242_v13 }
  0x9d   : > { %912 = vmatprep.subr.msk.bf16.mxu0 %vm911_vm1, %v910_v3  ;;  %388 = vst.msk [vmem:[#allocation4] sm:$0xff] %vm387_vm0, %v1242_v13  ;;  %389 = vst.msk [vmem:[#allocation4 + $0x8] sm:$0xff] %vm387_vm0, %v1242_v13  ;;  %v396_v22 = vld [vmem:[%s324_s12] sm:$0xff]  ;;  %v397_v23 = vld [vmem:[%s324_s12 + $0x8] sm:$0xff]  ;;  %s372_s21 = scalar_lea.vmem [#allocation13], %s1517_s26  ;;  %s883_s24 = sshll.u32 %s1222_s18, 8 }
  0x9e   : > { %900 = vmatprep.mubr.msk.f32.mxu0 %vm387_vm0, %v392_v4  ;;  %915 = vmatpush3.bf16.xpose.msk.msra.mxu0 %vm911_vm1, %v910_v3  ;;  %386 = vst.msk [vmem:[#allocation3 + $0x8] sm:$0xff] %vm382_vm2, %v1242_v13  ;;  %v916_v24 = vpack.c.bf16 %v397_v23, %v396_v22  ;;  %v885_v31 = vld [vmem:[%s1534_s22] sm:$0xff]   ;;  %s680_s27 = sshll.u32 %s372_s21, 4  ;;  %s1575_s14 = scalar_lea.hbm %s1628_s4, %s883_s24  ;;  %s1569_s27 = int_to_ptr.vmem [resolvable:$true] %s680_s27 }
  0x9f   : > { %v886_v32 = vunpack.c.l.bf16 %v885_v31  ;;  %v887_v35 = vunpack.c.h.bf16 %v885_v31  ;;  %s665_s9 = scalar_lea.sflag [#allocation7], %s1514_s25  ;;  %s1140_s6 = scalar_lea.vmem %s1569_s27, 256 }
  0xa0   : > { %917 = vmatprep.subr.bf16.mxu1 %v916_v24  ;;  %p1141_p13 = scmp.ne.s32.totalorder %s1569_s27, %s1140_s6  ;;  %p1661_p1 = scmp.ne.s32.totalorder %s1646_s28, 0 }
  0xa1   : > { %919 = vmatpush3.bf16.msra.mxu1 %v916_v24  ;;  %s1243_s18 = smov [#allocation13]  }
  0xa2   : > { %v486_v14 = vld [vmem:[#allocation2] sm:$0xff]  ;;  %p1142_p10 = pnand %p1141_p13, %p1661_p1  ;;  %s1144_s11 = sshll.u32 %s1243_s18, 4  ;;  %s1145_s11 = int_to_ptr.vmem [resolvable:$false] %s1144_s11 }
  0xa3   : > { %v487_v17 = vld [vmem:[#allocation2 + $0x8] sm:$0xff]  ;;  %v519_v44 = vld [vmem:[#allocation3] sm:$0xff]  ;;  %s1146_s0 = scalar_lea.vmem %s1145_s11, 512  ;;  %p1147_p11 = scmp.lt.s32.totalorder %s1569_s27, %s1145_s11 }
  0xa4   : > { %v541_v56 = vld [vmem:[#allocation4 + $0x8] sm:$0xff]  ;;  %v540_v58 = vld [vmem:[#allocation4] sm:$0xff]  ;;  %p1143_p12 = pneg %p1142_p10  ;;  %p1148_p5 = scmp.lt.s32.totalorder %s1146_s0, %s1140_s6 }
  0xa5   : > { %901 = vmatmul.mubr.msk.f32.vlgmr.msra.gmra.mrb[0].mxu0 %vm387_vm0, %v393_v6  ;;  %v520_v47 = vld [vmem:[#allocation3 + $0x8] sm:$0xff] }
  0xa6   : > { %p1149_p4 = por %p1148_p5, %p1147_p11 }
  0xa8   : > { %p1150_p6 = pnand %p1149_p4, %p1143_p12 }
 0x178   : > { %v902_v8 = vpop.f32.mrb[0].mxu0 }
 0x179   : > { %v477_v9 = vpop.f32.mrb[1].mxu0  ;;  %v492_v11 = vsel %vm488_vm3, %v902_v8, -inf }
 0x17a   : > { %v489_v10 = vsel %vm488_vm3, %v477_v9, -inf }
 0x17b   : > { %490 = vmax.xlane.f32.xlu0 %v489_v10 }
 0x17f   : > { %493 = vmax.xlane.f32.xlu0 %v492_v11 }
 0x208   : > { %v491_v15 = vpop.xlane.xlu0 %490 }
 0x209   : > { %v495_v16 = vmax.f32 %v486_v14, %v491_v15 }
 0x20b   : > { %v497_v18 = vsub.f32 %v486_v14, %v495_v16  ;;  %639 = vst.msk [vmem:[#allocation2] sm:$0xff] %vm382_vm2, %v495_v16  ;;  %505 = vperm.xlu1 %1006, %v495_v16  }
 0x20c   : > { %v494_v19 = vpop.xlane.xlu0 %493 }
 0x20d   : > { %v496_v20 = vmax.f32 %v487_v17, %v494_v19  ;;  %v499_v41 = vmul.f32 1.442695, %v497_v18 }
 0x20f   : > { %v498_v21 = vsub.f32 %v487_v17, %v496_v20  ;;  %640 = vst.msk [vmem:[#allocation2 + $0x8] sm:$0xff] %vm382_vm2, %v496_v20  ;;  %510 = vperm.xlu1 %1006, %v496_v20  }
 0x211   : > { %v501_v40 = vmul.f32 1.442695, %v498_v21 }
 0x28a   : > { %v506_v25 = vpop.permute.xlu1 %505 }
 0x28b   : > { %v513_v26 = vsub.f32 %v477_v9, %v506_v25 }
 0x28d   : > { %v515_v27 = vmul.f32 1.442695, %v513_v26 }
 0x28e   : > { %v511_v28 = vpop.permute.xlu1 %510 }
 0x28f   : > { %1008 = vpow2.f32 %v515_v27  ;;  %v514_v29 = vsub.f32 %v902_v8, %v511_v28 }
 0x291   : > { %v517_v30 = vmul.f32 1.442695, %v514_v29 }
 0x293   : > { %1010 = vpow2.f32 %v517_v30 }
 0x294   : > { %1012 = vpow2.f32 %v501_v40 }
 0x295   : > { %1014 = vpow2.f32 %v499_v41 }
 0x299   : > { %v1009_v33 = vpop.eup %1008 }
 0x29a   : > { %v523_v34 = vsel %vm488_vm3, %v1009_v33, 0.0  ;;  %v538_v36 = vmul.f32 %v1009_v33, %v886_v32 }
 0x29b   : > { %524 = vadd.xlane.f32.xlu0 %v523_v34 }
 0x29c   : > { %907 = vmatprep.mubr.msk.f32.mxu1 %vm488_vm3, %v538_v36 }
 0x29d   : > { %v1011_v37 = vpop.eup %1010 }
 0x29e   : > { %v526_v38 = vsel %vm488_vm3, %v1011_v37, 0.0  ;;  %v539_v39 = vmul.f32 %v1011_v37, %v887_v35  ;;  %v1013_v42 = vpop.eup %1012 }
 0x29f   : > { %527 = vadd.xlane.f32.xlu1 %v526_v38  ;;  %v1015_v43 = vpop.eup %1014  ;;  %v522_v49 = vmul.f32 %v1013_v42, %v520_v47 }
 0x2a0   : > { %908 = vmatmul.mubr.msk.f32.vlgmr.msra.gmra.mrb[0].mxu1 %vm488_vm3, %v539_v39  ;;  %v521_v45 = vmul.f32 %v1015_v43, %v519_v44 }
 0x2b0   : > { %549 = vperm.xlu1 %1006, %v1013_v42  }
 0x2b1   : > { %544 = vperm.xlu0 %1007, %v1015_v43  }
 0x328   : > { %v525_v46 = vpop.xlane.xlu0 %524 }
 0x329   : > { %v529_v48 = vadd.f32 %v525_v46, %v521_v45 }
 0x32b   : > { %532 = vst.msk [vmem:[#allocation3] sm:$0xff] %vm382_vm2, %v529_v48 }
 0x32c   : > { %v528_v50 = vpop.xlane.xlu1 %527 }
 0x32d   : > { %v530_v51 = vadd.f32 %v528_v50, %v522_v49 }
 0x32f   : > { %533 = vst.msk [vmem:[#allocation3 + $0x8] sm:$0xff] %vm382_vm2, %v530_v51 }
 0x330   : > { %v550_v57 = vpop.permute.xlu1 %549  ;;  %v545_v59 = vpop.permute.xlu0 %544 }
 0x331   : > { %v553_v60 = vmul.f32 %v550_v57, %v541_v56  ;;  %v552_v61 = vmul.f32 %v545_v59, %v540_v58 }
 0x332   : > { %v644_v52 = vld [vmem:[#allocation3] sm:$0xff] }
 0x333   : > { %1016 = vrcp.f32 %v644_v52 }
 0x336   : > { %v645_v53 = vld [vmem:[#allocation3 + $0x8] sm:$0xff] }
 0x337   : > { %1018 = vrcp.f32 %v645_v53 }
 0x33d   : > { %v1017_v54 = vpop.eup %1016 }
 0x33e   : > { %652 = vperm.xlu0 %1007, %v1017_v54  }
 0x341   : > { %v1019_v55 = vpop.eup %1018 }
 0x342   : > { %657 = vperm.xlu0 %1007, %v1019_v55  }
 0x373   : > { %v909_v62 = vpop.f32.mrb[0].mxu1 }
 0x374   : > { %v636_v63 = vadd.f32 %v909_v62, %v553_v60  ;;  %v626_v0 = vpop.f32.mrb[1].mxu1 }
 0x375   : > { %v635_v1 = vadd.f32 %v626_v0, %v552_v61 }
 0x376   : > { %638 = vst.msk [vmem:[#allocation4 + $0x8] sm:$0xff] %vm387_vm0, %v636_v63 }
 0x377   : > { %637 = vst.msk [vmem:[#allocation4] sm:$0xff] %vm387_vm0, %v635_v1 }
 0x37d   : > { %v649_v5 = vld [vmem:[#allocation4 + $0x8] sm:$0xff] }
 0x37e   : > { %v648_v2 = vld [vmem:[#allocation4] sm:$0xff] }
 0x3bd   : > { %v653_v3 = vpop.permute.xlu0 %652 }
 0x3be   : > { %v660_v4 = vmul.f32 %v653_v3, %v648_v2 }
 0x3c0   : > { %662 = vst.msk [vmem:[%s372_s21] sm:$0xff] %vm387_vm0, %v660_v4 }
 0x3c1   : > { %v658_v6 = vpop.permute.xlu0 %657 }
 0x3c2   : > { %v661_v7 = vmul.f32 %v658_v6, %v649_v5 }
 0x3c4   : > { %663 = vst.msk [vmem:[%s372_s21 + $0x8] sm:$0xff] %vm387_vm0, %v661_v7 }
 0x3c5   : > { %1153 = shalt.err (!%p1150_p6)
}
 0x3c6   : > { %s1154_s10 = scalar_lea.hbm %s1575_s14, 256  ;;  %s1158_s23 = scalar_lea.hbm %s1628_s4, 2048 }
 0x3c7   : > { %p1155_p2 = scmp.ne.s32.totalorder %s1575_s14, %s1154_s10  ;;  %p1159_p0 = scmp.lt.u32.totalorder %s1575_s14, %s1628_s4 }
 0x3c8   : > { %p1160_p3 = scmp.lt.u32.totalorder %s1158_s23, %s1154_s10  ;;  %p1162_p13 = scmp.lt.u32.totalorder %s1154_s10, %s1575_s14 }
 0x3c9   : > { %p1156_p7 = pnand %p1155_p2, %p1661_p1 }
 0x3ca   : > { %p1161_p8 = por %p1160_p3, %p1159_p0 }
 0x3cb   : > { %p1157_p9 = pneg %p1156_p7 }
 0x3cc   : > { %p1163_p10 = por %p1162_p13, %p1161_p8 }
 0x3ce   : > { %p1164_p12 = pnand %p1163_p10, %p1157_p9 }
 0x3d0   : > { %1167 = shalt.err (!%p1164_p12)
}
 0x3d1   : > { %s1244_s8 = smov 128   ;;  %s1245_s13 = smov 8  }
 0x3d2   : > { %928 = dma.vmem_to_hbm [thread:$0]  (%p1661_p1), %s1569_s27, 256, %s1575_s14, %s665_s9, %s1244_s8, %s1244_s8, %s1245_s13  }
 0x3d3 PF: > { %s1662_s7 = sld [smem:[#allocation18_spill]]  ;;  %s1663_s12 = sld [smem:[#allocation22_spill]] }
 0x3d4   : > { %p948_p11 = scmp.ge.s32.totalorder %s1230_s20, 2 }
 0x3d9   : > { %s695_s15 = sand.u32 1, %s1662_s7   ;;  %p1664_p5 = scmp.ne.s32.totalorder %s1663_s12, 0 }
 0x3da   : > { %s696_s22 = scalar_lea.sflag [#allocation7], %s695_s15 }
 0x3db   : > { %p944_p4 = pnand %p948_p11, %p1664_p5 }
 0x3dd   : > { %1205 = dma.done.wait (!%p944_p4), %s696_s22, 256  }
 0x3de   : > { %1207 = vsyncadd (!%p944_p4), %s696_s22, 4294967040  ;;  %s26_s20 = sadd.s32 1, %s1230_s20   ;;  %s1665_s21 = sld [smem:[#allocation19_spill]] }
 0x3df   : > { %p23_p6 = scmp.ge.s32.totalorder %s26_s20, 10   ;;  %s1666_s17 = sld [smem:[#allocation21_spill]] }
 0x3e0   : > { %s1667_s28 = sld [smem:[#allocation20_spill]]  ;;  %s1668_s15 = smov %s1214_s16 }
 0x3e1   : > { %s1670_s18 = smov %s1226_s19  ;;  %25 = sbr.rel (!%p23_p6) target bundleno = 13 (0xd), region = 126 }
 0x3e4   : > { %s1669_s16 = smov %s1665_s21 }
 0x3e6   : > { %s1671_s19 = smov %s1667_s28 }
 0x3e8   :  { %701 = vsyncpa [#allocation6], 1 }
 0x3e9   :  { %703 = vsyncpa [#allocation6 + $0x1], 1 }
 0x3ea   :  { %704 = vsyncpa [#allocation9], 1 }
 0x3eb   :  { %706 = vsyncpa [#allocation9 + $0x1], 1 }
 0x3ec   :  { %707 = vsyncpa [#allocation12], 1 }
 0x3ed   :  { %709 = vsyncpa [#allocation12 + $0x1], 1 }
 0x3ee   :  { %710 = vsyncpa [#allocation7], 1 }
 0x3ef   :  { %712 = vsyncpa [#allocation7 + $0x1], 1 }

</bundles_post_ra>
